<compile_context>
chip_gen: v5e
topology: v5e:2x2
jax: 0.10.0
libtpu: 0.0.40
codegen_flags: <defaults>
</compile_context>

<pallas_src>
import functools

import jax
import jax.numpy as jnp
from jax.experimental import pallas as pl
from jax.experimental.pallas import tpu as pltpu


def _make_projconv_kernel(c_in, c_out, use_mxu):
    """Builds the kernel body. Refs:
       x_ref: (1, C_in, tile_n)   w_ref: (C_out, C_in)   b_ref: (C_out, 1)
       o_ref: (1, C_out, tile_n)
    """

    def kernel(x_ref, w_ref, b_ref, o_ref):
        x = x_ref[0]                                     # (C_in, n), pixels on lanes
        r = jnp.maximum(x, jnp.zeros_like(x))            # ReLU (VPU)

        if use_mxu:
            # Large-C path: channel contraction on the MXU, f32 accumulation.
            y = jnp.dot(w_ref[...], r.astype(w_ref.dtype),
                        preferred_element_type=jnp.float32)        # (C_out, n)
        else:
            # Small-C path: unrolled VPU FMAs, no MXU push/pop or relayouts.
            w = w_ref[...].astype(jnp.float32)            # (C_out, C_in), one vreg
            rf = r.astype(jnp.float32)
            y = w[:, 0:1] * rf[0:1, :]                    # (C_out,1)*(1,n) -> (C_out,n)
            for i in range(1, c_in):
                y = y + w[:, i:i + 1] * rf[i:i + 1, :]

        y = y + b_ref[...].astype(jnp.float32)            # bias broadcast over lanes
        o_ref[0] = (x.astype(jnp.float32) + y).astype(o_ref.dtype)   # skip connection

    return kernel


def projconv_forward(x_nchw, weight, bias, *, tile_n=2048, mxu_threshold=128):
    """ProjConv forward for a single map.

    x_nchw: [B, C, H, W]; weight: [C_out, C_in] (1x1 conv kernel squeezed); bias: [C_out].
    """
    B, C, H, W = x_nchw.shape
    C_out, C_in = weight.shape
    assert C == C_in and C == C_out, "skip=True requires in_channels == out_channels"

    P = H * W
    x3 = x_nchw.reshape(B, C, P)                 # pure view: NCHW kept, no transpose

    # Lane-dense tiling of the pixel axis; pad to a multiple of the tile if needed.
    LANE = 128
    p_round = pl.cdiv(P, LANE) * LANE
    tn = max(LANE, min((tile_n // LANE) * LANE, p_round))
    P_pad = pl.cdiv(P, tn) * tn
    if P_pad != P:
        x3 = jnp.pad(x3, ((0, 0), (0, 0), (0, P_pad - P)))

    use_mxu = C_in >= mxu_threshold
    # Weight stays resident in VMEM. f32 for the VPU path; activation dtype (e.g. bf16)
    # for the MXU path so v6e/v7x run the MXU at native width.
    w_mat = weight.astype(x_nchw.dtype if use_mxu else jnp.float32)   # (C_out, C_in)
    b_col = bias.reshape(C_out, 1).astype(jnp.float32)                # (C_out, 1)

    grid = (B, P_pad // tn)
    itemsize = jnp.dtype(x_nchw.dtype).itemsize

    # VMEM budget: double-buffered in/out tiles + resident weight/bias + slack.
    tile_bytes = C * tn * itemsize
    need = 4 * tile_bytes + 2 * (C_out * C_in * 4 + C_out * 4) + (1 << 20)
    vmem_limit = int(min(48 << 20, max(need, 32 << 20)))   # <= 48 MiB: safe on v7x too

    cost = pl.CostEstimate(
        flops=2 * B * P_pad * C_in * C_out,
        transcendentals=0,
        bytes_accessed=2 * B * P_pad * C * itemsize + C_in * C_out * itemsize,
    )

    kernel = _make_projconv_kernel(C_in, C_out, use_mxu)

    out3 = pl.pallas_call(
        kernel,
        out_shape=jax.ShapeDtypeStruct((B, C_out, P_pad), x_nchw.dtype),
        grid_spec=pl.GridSpec(
            grid=grid,
            in_specs=[
                pl.BlockSpec((1, C, tn), lambda b, j: (b, 0, j)),       # x tile
                pl.BlockSpec((C_out, C_in), lambda b, j: (0, 0)),       # full weight
                pl.BlockSpec((C_out, 1), lambda b, j: (0, 0)),          # bias column
            ],
            out_specs=pl.BlockSpec((1, C_out, tn), lambda b, j: (b, 0, j)),
        ),
        compiler_params=pltpu.CompilerParams(
            dimension_semantics=("parallel", "parallel"),
            vmem_limit_bytes=vmem_limit,
        ),
        cost_estimate=cost,
    )(x3, w_mat, b_col)

    if P_pad != P:
        out3 = out3[:, :, :P]
    return out3.reshape(B, C_out, H, W)


def projconv_apply(map_input, weight, bias, **kw):
    """Mirrors ProjConv.forward: accepts a single map or a list/tuple of maps."""
    if isinstance(map_input, (list, tuple)):
        return [projconv_forward(m, weight, bias, **kw) for m in map_input]
    return projconv_forward(map_input, weight, bias, **kw)


if __name__ == "__main__":
    key = jax.random.PRNGKey(0)
    k_x, k_w, k_b = jax.random.split(key, 3)

    B, C, H, W = 2, 4, 16, 16   # in_channels = out_channels = 4 (skip=True)
    x = jax.random.normal(k_x, (B, C, H, W), dtype=jnp.float32)

    # Deterministic parameter init (mimics Conv2d 1x1 weight [C_out, C_in, 1, 1] + bias).
    fan_in = C * 1 * 1
    bound = 1.0 / (fan_in ** 0.5)
    weight = jax.random.uniform(k_w, (C, C), minval=-bound, maxval=bound, dtype=jnp.float32)
    bias = jax.random.uniform(k_b, (C,), minval=-bound, maxval=bound, dtype=jnp.float32)

    out = projconv_apply(x, weight, bias)
    out = jax.block_until_ready(out)

    # Sanity check against a plain-JAX reference of the same math.
    r = jnp.maximum(x, 0.0)
    ref = x + (jnp.einsum('bchw,oc->bohw', r, weight) + bias[None, :, None, None])
    assert out.shape == (B, C, H, W)
    assert jnp.allclose(out, ref, atol=1e-5, rtol=1e-5)

    print("KERNEL_OK")
</pallas_src>

<mosaic_0001>
module attributes {stable_mosaic.version = 11 : i64} {
  func.func @kernel(%arg0: i32, %arg1: i32, %arg2: memref<1x4x256xf32, #tpu.memory_space<vmem>>, %arg3: memref<4x4xf32, #tpu.memory_space<vmem>>, %arg4: memref<4x1xf32, #tpu.memory_space<vmem>>, %arg5: memref<1x4x256xf32, #tpu.memory_space<vmem>>) attributes {dimension_semantics = [#tpu.dimension_semantics<parallel>, #tpu.dimension_semantics<parallel>], iteration_bounds = array<i64: 2, 1>, scalar_prefetch = 0 : i64, scratch_operands = 0 : i64, tpu.core_type = #tpu.core_type<tc>, window_params = [{transform_indices = @transform_0, window_bounds = array<i64: 1, 4, 256>}, {pipeline_mode = #tpu.pipeline_mode<synchronous>, transform_indices = @transform_1, window_bounds = array<i64: 4, 4>}, {pipeline_mode = #tpu.pipeline_mode<synchronous>, transform_indices = @transform_2, window_bounds = array<i64: 4, 1>}, {transform_indices = @transform_3, window_bounds = array<i64: 1, 4, 256>}]} {
    %c0 = arith.constant 0 : index
    %c0_0 = arith.constant 0 : index
    %c0_1 = arith.constant 0 : index
    %0 = vector.load %arg2[%c0, %c0_0, %c0_1] : memref<1x4x256xf32, #tpu.memory_space<vmem>>, vector<1x4x256xf32>
    %1 = vector.shape_cast %0 : vector<1x4x256xf32> to vector<4x256xf32>
    %cst = arith.constant 0.000000e+00 : f32
    %2 = vector.broadcast %cst : f32 to vector<4x256xf32>
    %3 = arith.maximumf %1, %2 : vector<4x256xf32>
    %c0_2 = arith.constant 0 : index
    %c0_3 = arith.constant 0 : index
    %4 = vector.load %arg3[%c0_2, %c0_3] : memref<4x4xf32, #tpu.memory_space<vmem>>, vector<4x4xf32>
    %5 = vector.extract_strided_slice %4 {offsets = [0, 0], sizes = [4, 1], strides = [1, 1]} : vector<4x4xf32> to vector<4x1xf32>
    %6 = vector.extract_strided_slice %3 {offsets = [0, 0], sizes = [1, 256], strides = [1, 1]} : vector<4x256xf32> to vector<1x256xf32>
    %7 = vector.broadcast %5 : vector<4x1xf32> to vector<4x256xf32>
    %8 = vector.broadcast %6 : vector<1x256xf32> to vector<4x256xf32>
    %9 = arith.mulf %7, %8 : vector<4x256xf32>
    %10 = vector.extract_strided_slice %4 {offsets = [0, 1], sizes = [4, 1], strides = [1, 1]} : vector<4x4xf32> to vector<4x1xf32>
    %11 = vector.extract_strided_slice %3 {offsets = [1, 0], sizes = [1, 256], strides = [1, 1]} : vector<4x256xf32> to vector<1x256xf32>
    %12 = vector.broadcast %10 : vector<4x1xf32> to vector<4x256xf32>
    %13 = vector.broadcast %11 : vector<1x256xf32> to vector<4x256xf32>
    %14 = arith.mulf %12, %13 : vector<4x256xf32>
    %15 = arith.addf %9, %14 : vector<4x256xf32>
    %16 = vector.extract_strided_slice %4 {offsets = [0, 2], sizes = [4, 1], strides = [1, 1]} : vector<4x4xf32> to vector<4x1xf32>
    %17 = vector.extract_strided_slice %3 {offsets = [2, 0], sizes = [1, 256], strides = [1, 1]} : vector<4x256xf32> to vector<1x256xf32>
    %18 = vector.broadcast %16 : vector<4x1xf32> to vector<4x256xf32>
    %19 = vector.broadcast %17 : vector<1x256xf32> to vector<4x256xf32>
    %20 = arith.mulf %18, %19 : vector<4x256xf32>
    %21 = arith.addf %15, %20 : vector<4x256xf32>
    %22 = vector.extract_strided_slice %4 {offsets = [0, 3], sizes = [4, 1], strides = [1, 1]} : vector<4x4xf32> to vector<4x1xf32>
    %23 = vector.extract_strided_slice %3 {offsets = [3, 0], sizes = [1, 256], strides = [1, 1]} : vector<4x256xf32> to vector<1x256xf32>
    %24 = vector.broadcast %22 : vector<4x1xf32> to vector<4x256xf32>
    %25 = vector.broadcast %23 : vector<1x256xf32> to vector<4x256xf32>
    %26 = arith.mulf %24, %25 : vector<4x256xf32>
    %27 = arith.addf %21, %26 : vector<4x256xf32>
    %c0_4 = arith.constant 0 : index
    %c0_5 = arith.constant 0 : index
    %28 = vector.load %arg4[%c0_4, %c0_5] : memref<4x1xf32, #tpu.memory_space<vmem>>, vector<4x1xf32>
    %29 = vector.broadcast %28 : vector<4x1xf32> to vector<4x256xf32>
    %30 = arith.addf %27, %29 : vector<4x256xf32>
    %31 = arith.addf %1, %30 : vector<4x256xf32>
    %c0_6 = arith.constant 0 : index
    %c0_7 = arith.constant 0 : index
    %c0_8 = arith.constant 0 : index
    %32 = vector.load %arg5[%c0_6, %c0_7, %c0_8] : memref<1x4x256xf32, #tpu.memory_space<vmem>>, vector<1x4x256xf32>
    %33 = vector.shape_cast %32 : vector<1x4x256xf32> to vector<4x256xf32>
    %34 = vector.shape_cast %31 : vector<4x256xf32> to vector<1x4x256xf32>
    tpu.vector_store %arg5[%c0_6, %c0_7, %c0_8], %34 {strides = array<i32>} : memref<1x4x256xf32, #tpu.memory_space<vmem>>, vector<1x4x256xf32>,
    return
  }
  func.func @transform_0(%arg0: i32, %arg1: i32) -> (i32, i32, i32) {
    %c0_i32 = arith.constant 0 : i32
    %c0_i32_0 = arith.constant 0 : i32
    return %arg0, %c0_i32, %arg1 : i32, i32, i32
  }
  func.func @transform_1(%arg0: i32, %arg1: i32) -> (i32, i32) {
    %c0_i32 = arith.constant 0 : i32
    %c0_i32_0 = arith.constant 0 : i32
    %c0_i32_1 = arith.constant 0 : i32
    return %c0_i32, %c0_i32_0 : i32, i32
  }
  func.func @transform_2(%arg0: i32, %arg1: i32) -> (i32, i32) {
    %c0_i32 = arith.constant 0 : i32
    %c0_i32_0 = arith.constant 0 : i32
    %c0_i32_1 = arith.constant 0 : i32
    return %c0_i32, %c0_i32_0 : i32, i32
  }
  func.func @transform_3(%arg0: i32, %arg1: i32) -> (i32, i32, i32) {
    %c0_i32 = arith.constant 0 : i32
    %c0_i32_0 = arith.constant 0 : i32
    return %arg0, %c0_i32, %arg1 : i32, i32, i32
  }
}

</mosaic_0001>

<bundles_post_ra>
// kernel: tpu_custom_call.1
= control target key start
LH: loop header
LB: loop body
LE: loop exit
PB: predicated region body
PF: predicated region fallthrough
CT: control target
= control target key end

     0   :  { %8 = vsyncpa [#allocation3], 0  ;;  %s744_s0 = inlined_call_operand.hbm [shape: f32[2,4,256], index: 0, kind: input, shape index: {}]   ;;  %s745_s1 = inlined_call_operand.vmem [shape: f32[4,4], index: 1, kind: input, shape index: {}]   ;;  %s746_s2 = inlined_call_operand.vmem [shape: f32[4,1], index: 2, kind: input, shape index: {}]   ;;  %s747_s3 = inlined_call_operand.hbm [shape: f32[2,4,256], index: 3, kind: output, shape index: {}]  }
   0x1   :  { %10 = vsyncpa [#allocation3 + $0x1], 0 }
   0x2   :  { %11 = vsyncpa [#allocation4], 0 }
   0x3   :  { %13 = vsyncpa [#allocation4 + $0x1], 0  ;;  %s614_s12 = smov 0   ;;  %s616_s13 = smov 0  }
   0x4   :  { %s618_s14 = smov 0   ;;  %s620_s15 = smov 0  }
   0x5   :  { %s622_s16 = smov 0   ;;  %s624_s17 = smov 0  }
   0x6 LB: > { %s387_s18 = sadd.s32 4294967295, %s588_s17   ;;  %s388_s19 = sadd.s32 4294967294, %s588_s17   ;;  %s588_s17 = sphi %s624_s17, %s19_s17   ;;  %s584_s16 = sphi %s622_s16, %s756_s16   ;;  %s580_s15 = sphi %s620_s15, %s755_s15   ;;  %s576_s14 = sphi %s618_s14, %s754_s14   ;;  %s572_s13 = sphi %s616_s13, %s753_s13   ;;  %s568_s12 = sphi %s614_s12, %s752_s12  }
   0x7   : > { %s31_s20 = sadd.s32 1, %s584_s16  ;;  %s40_s21 = sadd.s32 1, %s576_s14 }
   0x8   : > { %p33_p0 = scmp.ge.s32.totalorder %s31_s20, 2  ;;  %p47_p1 = scmp.ne.s32.totalorder %s576_s14, %s572_s13 }
   0x9   : > { %p48_p2 = scmp.eq.s32.totalorder %s588_s17, 0  ;;  %p53_p3 = scmp.ne.s32.totalorder %s572_s13, %s568_s12 }
   0xa   : > { %s758_s20 = smov (%p33_p0, %s31_s20), 0  ;;  %p54_p5 = scmp.eq.s32.totalorder %s387_s18, 0 }
   0xb   : > { %p655_p4 = por %p48_p2, %p47_p1  ;;  %s35_s23 = ssub.s32 %s584_s16, %s758_s20 }
   0xc   : > { %p121_p6 = scmp.eq.s32.totalorder %s387_s18, 1  ;;  %p38_p7 = scmp.eq.s32.totalorder %s35_s23, 0 }
   0xd   : > { %p661_p8 = por %p54_p5, %p53_p3  ;;  %p127_p10 = scmp.eq.s32.totalorder %s388_s19, 1 }
   0xe   : > { %p665_p9 = por %p121_p6, %p47_p1  ;;  %p390_p12 = scmp.ge.s32.totalorder %s588_s17, 2 }
   0xf   : > { %s670_s26 = scalar_select %p38_p7, %s576_s14, %s40_s21  }
  0x10   : > { %p672_p11 = por %p127_p10, %p53_p3  ;;  %p416_p13 = scmp.lt.s32.totalorder %s588_s17, 2 }
  0x11   : > { %s153_s28 = sand.u32 1, %s576_s14   ;;  %s402_s30 = sshll.u32 %s584_s16, 3 }
  0x12   : > { %s391_s29 = sshll.u32 %s153_s28, 3  ;;  %s164_s6 = scalar_lea.hbm %s744_s0, %s402_s30 }
  0x13   : > { %s157_s7 = scalar_lea.vmem [#allocation2], %s391_s29  ;;  %s166_s9 = sshll.u32 %s164_s6, 4  ;;  %s167_s9 = int_to_ptr.hbm [resolvable:$true] %s166_s9 }
  0x14   : > { %s168_s8 = sshll.u32 %s157_s7, 4  ;;  %p409_p0 = pnand %p416_p13, %p655_p4  ;;  %s169_s8 = int_to_ptr.vmem [resolvable:$true] %s168_s8 }
  0x15   : > { %p394_p1 = scmp.ge.s32.totalorder %s588_s17, 1  ;;  %p173_p2 = scmp.lt.s32.totalorder %s588_s17, 3 }
  0x16   : > { %s154_s10 = scalar_lea.sflag [#allocation3], %s153_s28 }
  0x17   : > { %411 = dma.hbm_to_vmem [thread:$0]  (!%p409_p0), %s167_s9, 128, %s169_s8, %s154_s10  }
  0x18   : > { %p174_p3 = pnand %p394_p1, %p173_p2 }
  0x19   : > { %s688_s11 = sand.u32 (!%p174_p3), 1, %s572_s13  }
  0x1a   : > { %177 = sbr.rel (%p174_p3) target bundleno = 176 (0xb0), region = 32  ;;  %s395_s18 = sshll.u32 (!%p174_p3), %s688_s11, 3 }
  0x1b   : > { %s180_s19 = scalar_lea.sflag (!%p174_p3), [#allocation3], %s688_s11  ;;  %s183_s21 = scalar_lea.vmem (!%p174_p3), [#allocation2], %s395_s18 }
  0x1f   : > { %559 = dma.done.wait (%p661_p8), %s180_s19, 128  }
  0x20   : > { %561 = vsyncadd (%p661_p8), %s180_s19, 4294967168  ;;  %v590_v0 = vmov 0   ;;  %v591_v1 = vmov 2   ;;  %v211_v2 = vld [vmem:[%s745_s1] sm:$0xf]  ;;  %v592_v4 = vmov 1  }
  0x21   : > { %470 = vset.pattern.permute.xlu0 %v590_v0  ;;  %472 = vset.pattern.permute.xlu1 %v591_v1  ;;  %v268_v3 = vld [vmem:[%s746_s2] sm:$0xf]  ;;  %v593_v5 = vmov 3   ;;  %s403_s24 = sshll.u32 %s580_s15, 3  ;;  %vm279_vm0 = vcmask 1043456   ;;  %s206_s6 = scalar_lea.vmem [#allocation5], %s395_s18 }
  0x22   : > { %474 = vset.pattern.permute.xlu2 %v590_v0  ;;  %214 = vperm.xlu0 %470, %v211_v2   ;;  %v209_v6 = vld [vmem:[%s183_s21] sm:$0xff]  ;;  %s298_s5 = scalar_lea.hbm %s747_s3, %s403_s24  ;;  %s300_s7 = sshll.u32 %s206_s6, 4  ;;  %s301_s7 = int_to_ptr.vmem [resolvable:$true] %s300_s7 }
  0x23   : > { %241 = vperm.xlu1 %472, %v211_v2   ;;  %271 = vperm.xlu2 %474, %v268_v3   ;;  %v210_v7 = vmax.f32 %v209_v6, 0.0  ;;  %s302_s8 = sshll.u32 %s298_s5, 4  ;;  %s285_s15 = scalar_lea.sflag [#allocation4], %s688_s11  ;;  %s303_s8 = int_to_ptr.hbm [resolvable:$true] %s302_s8 }
  0x24   : > { %s520_s9 = sshra.s32 %s303_s8, 4  ;;  %s526_s22 = scalar_lea.hbm %s747_s3, 16  ;;  %s521_s9 = int_to_ptr.hbm [resolvable:$true] %s520_s9 }
  0x25   : > { %v218_v10 = vperm.slane %v210_v7, 0  ;;  %v219_v11 = vperm.slane %v210_v7, 4  ;;  %v230_v12 = vperm.slane %v210_v7, 1  ;;  %v231_v13 = vperm.slane %v210_v7, 5  ;;  %s522_s10 = scalar_lea.hbm %s521_s9, 8  ;;  %p527_p7 = scmp.lt.s32.totalorder %s521_s9, %s747_s3 }
  0x26   : > { %v244_v14 = vperm.slane %v210_v7, 2  ;;  %v245_v15 = vperm.slane %v210_v7, 6  ;;  %v258_v16 = vperm.slane %v210_v7, 3  ;;  %v259_v17 = vperm.slane %v210_v7, 7  ;;  %p523_p4 = scmp.ne.s32.totalorder %s521_s9, %s522_s10  ;;  %p528_p8 = scmp.lt.s32.totalorder %s526_s22, %s522_s10 }
  0x27   : > { %v222_v18 = vperm.slane %v218_v10, 0  ;;  %v223_v19 = vperm.slane %v219_v11, 0  ;;  %v234_v20 = vperm.slane %v230_v12, 1  ;;  %v235_v21 = vperm.slane %v231_v13, 1 }
  0x28   : > { %v248_v22 = vperm.slane %v244_v14, 2  ;;  %v249_v23 = vperm.slane %v245_v15, 2  ;;  %v262_v24 = vperm.slane %v258_v16, 3  ;;  %v263_v25 = vperm.slane %v259_v17, 3  ;;  %p524_p5 = pnand %p523_p4, %p665_p9  ;;  %p529_p10 = por %p528_p8, %p527_p7 }
  0x2a   : > { %471 = vset.pattern.permute.xlu0 %v592_v4  ;;  %p525_p6 = pneg %p524_p5 }
  0x2b   : > { %473 = vset.pattern.permute.xlu1 %v593_v5  ;;  %227 = vperm.xlu0 %471, %v211_v2  }
  0x2c   : > { %255 = vperm.xlu1 %473, %v211_v2   ;;  %p530_p13 = pnand %p529_p10, %p525_p6 }
  0x33   : > { %475 = vset.pattern.permute.xlu0 %v590_v0 }
  0x7d   : > { %v272_v40 = vpop.permute.xlu2 %271 }
  0x94   : > { %v215_v8 = vpop.permute.xlu0 %214 }
  0x95   : > { %v242_v9 = vpop.permute.xlu1 %241  ;;  %v224_v28 = vmul.f32 %v222_v18, %v215_v8  ;;  %v225_v29 = vmul.f32 %v223_v19, %v215_v8 }
  0x96   : > { %v250_v32 = vmul.f32 %v248_v22, %v242_v9  ;;  %v251_v33 = vmul.f32 %v249_v23, %v242_v9 }
  0x9d   : > { %v228_v26 = vpop.permute.xlu0 %227 }
  0x9e   : > { %v256_v27 = vpop.permute.xlu1 %255  ;;  %v236_v30 = vmul.f32 %v234_v20, %v228_v26  ;;  %v237_v31 = vmul.f32 %v235_v21, %v228_v26 }
  0x9f   : > { %v264_v36 = vmul.f32 %v262_v24, %v256_v27  ;;  %v265_v37 = vmul.f32 %v263_v25, %v256_v27 }
  0xa0   : > { %v238_v34 = vadd.f32 %v236_v30, %v224_v28  ;;  %v239_v35 = vadd.f32 %v237_v31, %v225_v29 }
  0xa2   : > { %v252_v38 = vadd.f32 %v250_v32, %v238_v34  ;;  %v253_v39 = vadd.f32 %v251_v33, %v239_v35 }
  0xa4   : > { %v266_v41 = vadd.f32 %v264_v36, %v252_v38  ;;  %v267_v42 = vadd.f32 %v265_v37, %v253_v39 }
  0xa6   : > { %v275_v43 = vadd.f32 %v272_v40, %v267_v42  ;;  %v274_v44 = vadd.f32 %v272_v40, %v266_v41 }
  0xa8   : > { %v278_v45 = vrot.slane %v275_v43, 4 }
  0xaa   : > { %v280_v46 = vsel %vm279_vm0, %v274_v44, %v278_v45 }
  0xab   : > { %v282_v47 = vadd.f32 %v280_v46, %v209_v6 }
  0xad   : > { %283 = vst [vmem:[%s206_s6] sm:$0xff] %v282_v47 }
  0xae   : > { %533 = shalt.err (!%p530_p13)
}
  0xaf   : > { %406 = dma.vmem_to_hbm [thread:$0]  (%p665_p9), %s301_s7, 128, %s303_s8, %s285_s15  }
  0xb0 PF: > { %s314_s11 = sand.u32 1, %s568_s12   ;;  %p413_p0 = pnand %p390_p12, %p672_p11 }
  0xb1   : > { %s315_s28 = scalar_lea.sflag [#allocation4], %s314_s11 }
  0xb2   : > { %p414_p1 = pneg %p413_p0 }
  0xb4   : > { %563 = dma.done.wait (%p414_p1), %s315_s28, 128  }
  0xb5   : > { %565 = vsyncadd (%p414_p1), %s315_s28, 4294967168  ;;  %s19_s17 = sadd.s32 1, %s588_s17   ;;  %s752_s12 = smov %s572_s13 }
  0xb6   : > { %p16_p2 = scmp.ge.s32.totalorder %s19_s17, 4   ;;  %s753_s13 = smov %s576_s14 }
  0xb7   : > { %s754_s14 = smov %s670_s26  ;;  %s755_s15 = smov %s584_s16 }
  0xb8   : > { %s756_s16 = smov %s758_s20  ;;  %18 = sbr.rel (!%p16_p2) target bundleno = 6 (0x6), region = 77 }
  0xbd   :  { %321 = vsyncpa [#allocation3], 1 }
  0xbe   :  { %323 = vsyncpa [#allocation3 + $0x1], 1 }
  0xbf   :  { %324 = vsyncpa [#allocation4], 1 }
  0xc0   :  { %326 = vsyncpa [#allocation4 + $0x1], 1 }

</bundles_post_ra>
